<compile_context>
chip_gen: v7x
topology: tpu7x:2x2x1
jax: 0.10.0
libtpu: 0.0.40
codegen_flags: <defaults>
</compile_context>

<pallas_src>
import functools

import jax
import jax.numpy as jnp
from jax.experimental import pallas as pl
from jax.experimental.pallas import tpu as pltpu

EPS = 1e-5  # torch.nn.LayerNorm default eps


def _layernorm(x, gamma, beta):
    # fp32 statistics regardless of matmul compute dtype.
    x = x.astype(jnp.float32)
    mu = jnp.mean(x, axis=-1, keepdims=True)
    var = jnp.mean((x - mu) ** 2, axis=-1, keepdims=True)
    return (x - mu) * jax.lax.rsqrt(var + EPS) * gamma + beta


# --------------------------------------------------------------------------- #
# Pass 1: LN1 + fused QKV projection (each token projected exactly once)
# --------------------------------------------------------------------------- #
def qkv_proj_kernel(x_ref, g1_ref, b1_ref, wqkv_ref, bqkv_ref, qkv_ref, *,
                    num_heads, compute_dtype, precision):
    D = x_ref.shape[-1]
    dh = D // num_heads
    h = _layernorm(x_ref[0], g1_ref[...], b1_ref[...]).astype(compute_dtype)
    # Single lane-dense (TQ, D) @ (D, 3D) matmul with fp32 MXU accumulation.
    qkv = jnp.dot(h, wqkv_ref[...], preferred_element_type=jnp.float32,
                  precision=precision) + bqkv_ref[...]
    scale = float(dh) ** -0.5
    qkv_ref[0, 0] = (qkv[:, :D] * scale).astype(qkv_ref.dtype)   # Q (pre-scaled)
    qkv_ref[0, 1] = qkv[:, D:2 * D].astype(qkv_ref.dtype)        # K
    qkv_ref[0, 2] = qkv[:, 2 * D:].astype(qkv_ref.dtype)         # V


# --------------------------------------------------------------------------- #
# Pass 2: flash attention over the flattened lower triangle + output projection
# --------------------------------------------------------------------------- #
def flash_attn_kernel(qtab_ref, ktab_ref,                       # scalar prefetch
                      q_ref, k_ref, v_ref, wo_ref, bo_ref,      # inputs
                      o_ref,                                    # output
                      m_scr, l_scr, acc_scr, ctx_scr,           # scratch
                      *, num_heads, compute_dtype, bf16_exp, approx_recip,
                      precision):
    H = num_heads
    TQ, D = q_ref.shape[-2], q_ref.shape[-1]
    TK = k_ref.shape[-2]
    dh = D // H
    cdt = compute_dtype

    t = pl.program_id(1)
    qi = qtab_ref[t]
    ki = ktab_ref[t]

    # First kv block of a query row: reset online-softmax state.
    @pl.when(ki == 0)
    def _init():
        m_scr[...] = jnp.full(m_scr.shape, -jnp.inf, jnp.float32)
        l_scr[...] = jnp.zeros(l_scr.shape, jnp.float32)
        acc_scr[...] = jnp.zeros(acc_scr.shape, jnp.float32)

    q_blk = q_ref[0, 0]          # (TQ, D), pre-scaled, compute dtype
    k_blk = k_ref[0, 0]          # (TK, D)
    v_blk = v_ref[0, 0]          # (TK, D)

    def accumulate(masked):
        if masked:
            # Diagonal block (qi == ki, TQ == TK): purely local causal mask.
            rows = jax.lax.broadcasted_iota(jnp.int32, (TQ, TK), 0)
            cols = jax.lax.broadcasted_iota(jnp.int32, (TQ, TK), 1)
            causal = rows >= cols
        # Static unroll is fine for the spec's small head count (num_head=4);
        # for H >= 8 switch to lax.fori_loop to bound live ranges.
        for hh in range(H):
            sl = slice(hh * dh, (hh + 1) * dh)
            s = jax.lax.dot_general(
                q_blk[:, sl], k_blk[:, sl],
                dimension_numbers=(((1,), (1,)), ((), ())),
                preferred_element_type=jnp.float32,
                precision=precision)                            # (TQ, TK) fp32
            if masked:
                s = jnp.where(causal, s, -1e30)
            m_prev = m_scr[hh]
            m_new = jnp.maximum(m_prev, jnp.max(s, axis=-1, keepdims=True))
            alpha = jnp.exp(m_prev - m_new)                     # fp32 rescale
            if bf16_exp:   # v6e/v7x bf16 EUP path
                p = jnp.exp((s - m_new).astype(jnp.bfloat16))
            else:
                p = jnp.exp(s - m_new)
            l_scr[hh] = alpha * l_scr[hh] + jnp.sum(
                p.astype(jnp.float32), axis=-1, keepdims=True)
            acc_scr[hh] = alpha * acc_scr[hh] + jnp.dot(
                p.astype(cdt), v_blk[:, sl].astype(cdt),
                preferred_element_type=jnp.float32, precision=precision)
            m_scr[hh] = m_new

    # Interior blocks (ki < qi) are fully causal-valid: no iota, no select.
    @pl.when(ki < qi)
    def _interior():
        accumulate(masked=False)

    # Diagonal block: masked accumulation, then finalize this query row.
    @pl.when(ki == qi)
    def _diag_and_finalize():
        accumulate(masked=True)
        # Pack normalized per-head contexts into a (TQ, D) scratch, then one
        # lane-dense (TQ, D) @ (D, D) output projection (no per-head matmuls).
        for hh in range(H):
            inv_l = pl.reciprocal(l_scr[hh], approx=approx_recip)
            ctx_scr[:, hh * dh:(hh + 1) * dh] = (acc_scr[hh] * inv_l).astype(cdt)
        attn = jnp.dot(ctx_scr[...], wo_ref[...],
                       preferred_element_type=jnp.float32,
                       precision=precision) + bo_ref[...]
        o_ref[0] = attn.astype(o_ref.dtype)


# --------------------------------------------------------------------------- #
# Pass 3: residual + LN2 + FFN + residual
# --------------------------------------------------------------------------- #
def ffn_kernel(x_ref, attn_ref, g2_ref, b2_ref, w1_ref, bf1_ref, w2_ref,
               bf2_ref, o_ref, *, compute_dtype, precision):
    x1 = x_ref[0].astype(jnp.float32) + attn_ref[0].astype(jnp.float32)
    h = _layernorm(x1, g2_ref[...], b2_ref[...]).astype(compute_dtype)
    f = jnp.dot(h, w1_ref[...], preferred_element_type=jnp.float32,
                precision=precision) + bf1_ref[...]
    f = jnp.maximum(f, 0.0).astype(compute_dtype)                 # ReLU
    f = jnp.dot(f, w2_ref[...], preferred_element_type=jnp.float32,
                precision=precision) + bf2_ref[...]
    # TODO(synk): dropout (attention-prob / FFN / residual) is an eval-mode
    # identity here; no RNG is threaded through the forward pass.
    o_ref[0] = (x1 + f).astype(o_ref.dtype)
    # TODO(synk): at very large D on v7x, additionally tile the 4D hidden dim
    # so w1/w2 need not be fully VMEM-resident.


# --------------------------------------------------------------------------- #
# Wrapper
# --------------------------------------------------------------------------- #
_MATMUL_WEIGHTS = ("wq", "wk", "wv", "wo", "w1", "w2")


def _device_kind():
    try:
        return jax.devices()[0].device_kind.lower()
    except Exception:
        return ""


def _vmem_capacity_bytes():
    try:
        return int(pltpu.get_tpu_info().vmem_capacity_bytes)
    except Exception:
        return 64 * 1024 * 1024   # conservative fallback (v7x per-TC size)


def _vmem_limit(est_bytes):
    # Advisory scoped-VMEM limit: generous headroom below the physical capacity
    # of the current generation (128 MiB on v5e/v6e, 64 MiB on v7x).
    cap = int(0.8 * _vmem_capacity_bytes())
    return int(min(cap, max(32 * 1024 * 1024, 2 * int(est_bytes))))


def _pick_block(S):
    # 256-wide tiles fill the 2x256 MXU on v6e/v7x; 128 matches v5e's 4x128 MXU.
    kind = _device_kind()
    target = 256 if ("v6" in kind or "v7" in kind) else 128
    b = min(S, target)
    while S % b:
        b //= 2
    return max(b, 1)


def decoder_block(x, params, num_heads, *, block_q=None,
                  compute_dtype=jnp.bfloat16):
    B, S, D = x.shape
    assert D % num_heads == 0
    dh = D // num_heads
    cdt = jnp.dtype(compute_dtype)
    if block_q is None:
        block_q = _pick_block(S)
    assert S % block_q == 0
    TQ = TK = block_q            # TQ == TK keeps the diagonal mask purely local
    nq = S // TQ

    exact_f32 = cdt == jnp.dtype(jnp.float32)
    precision = jax.lax.Precision.HIGHEST if exact_f32 else None
    kind = _device_kind()
    bf16_exp = (not exact_f32) and ("v6" in kind or "v7" in kind)

    # Cast matmul weights once (halves weight HBM/VMEM traffic on the bf16 path).
    p = {k: (v.astype(cdt) if k in _MATMUL_WEIGHTS else v)
         for k, v in params.items()}
    wqkv = jnp.concatenate([p["wq"], p["wk"], p["wv"]], axis=1)            # (D, 3D)
    bqkv = jnp.concatenate([params["bq"], params["bk"], params["bv"]], axis=1)

    # ---- pass 1: LN1 + fused QKV projection --------------------------------
    est1 = (2 * (TQ * D * 4 + 3 * TQ * D * cdt.itemsize)
            + 2 * (3 * D * D * cdt.itemsize + 3 * D * 4)
            + 4 * TQ * 3 * D * 4)
    qkv = pl.pallas_call(
        functools.partial(qkv_proj_kernel, num_heads=num_heads,
                          compute_dtype=cdt, precision=precision),
        out_shape=jax.ShapeDtypeStruct((B, 3, S, D), cdt),
        grid=(B, nq),
        in_specs=[
            pl.BlockSpec((1, TQ, D), lambda b, i: (b, i, 0)),
            pl.BlockSpec((1, D), lambda b, i: (0, 0)),
            pl.BlockSpec((1, D), lambda b, i: (0, 0)),
            # constant index maps -> weights stay resident, no re-DMA over grid
            pl.BlockSpec((D, 3 * D), lambda b, i: (0, 0)),
            pl.BlockSpec((1, 3 * D), lambda b, i: (0, 0)),
        ],
        out_specs=pl.BlockSpec((1, 3, TQ, D), lambda b, i: (b, 0, i, 0)),
        compiler_params=pltpu.CompilerParams(
            dimension_semantics=("parallel", "parallel"),
            vmem_limit_bytes=_vmem_limit(est1)),
    )(x, params["g1"], params["b1"], wqkv, bqkv)

    # ---- pass 2: flash attention over the flattened lower triangle ---------
    q_idx, k_idx = [], []
    for qb in range(nq):
        for kb in range(qb + 1):
            q_idx.append(qb)
            k_idx.append(kb)
    n_tri = len(q_idx)
    q_tbl = jnp.asarray(q_idx, jnp.int32)
    k_tbl = jnp.asarray(k_idx, jnp.int32)

    est2 = (2 * 3 * TQ * D * cdt.itemsize                    # q/k/v blocks
            + 2 * (D * D * cdt.itemsize + D * 4)             # wo / bo
            + 2 * TQ * D * 4                                 # output block
            + num_heads * TQ * (8 + 4 * dh)                  # m/l/acc scratch
            + TQ * D * cdt.itemsize                          # packed context
            + 6 * TQ * TK * 4)                               # score/prob temps
    attn = pl.pallas_call(
        functools.partial(flash_attn_kernel, num_heads=num_heads,
                          compute_dtype=cdt, bf16_exp=bf16_exp,
                          approx_recip=not exact_f32, precision=precision),
        out_shape=jax.ShapeDtypeStruct((B, S, D), jnp.float32),
        grid_spec=pltpu.PrefetchScalarGridSpec(
            num_scalar_prefetch=2,
            grid=(B, n_tri),
            in_specs=[
                pl.BlockSpec((1, 1, TQ, D), lambda b, t, qt, kt: (b, 0, qt[t], 0)),
                pl.BlockSpec((1, 1, TK, D), lambda b, t, qt, kt: (b, 1, kt[t], 0)),
                pl.BlockSpec((1, 1, TK, D), lambda b, t, qt, kt: (b, 2, kt[t], 0)),
                pl.BlockSpec((D, D), lambda b, t, qt, kt: (0, 0)),
                pl.BlockSpec((1, D), lambda b, t, qt, kt: (0, 0)),
            ],
            out_specs=pl.BlockSpec((1, TQ, D), lambda b, t, qt, kt: (b, qt[t], 0)),
            scratch_shapes=[
                pltpu.VMEM((num_heads, TQ, 1), jnp.float32),   # running max
                pltpu.VMEM((num_heads, TQ, 1), jnp.float32),   # running sum
                pltpu.VMEM((num_heads, TQ, dh), jnp.float32),  # PV accumulator
                pltpu.VMEM((TQ, D), cdt),                      # packed context
            ]),
        compiler_params=pltpu.CompilerParams(
            dimension_semantics=("parallel", "arbitrary"),
            vmem_limit_bytes=_vmem_limit(est2)),
    )(q_tbl, k_tbl, qkv, qkv, qkv, p["wo"], params["bo"])

    # ---- pass 3: residual + LN2 + FFN + residual ----------------------------
    est3 = (2 * 3 * TQ * D * 4
            + 2 * ((4 * D * D + 4 * D * D) * cdt.itemsize + 5 * D * 4)
            + 4 * TQ * 4 * D * 4)
    out = pl.pallas_call(
        functools.partial(ffn_kernel, compute_dtype=cdt, precision=precision),
        out_shape=jax.ShapeDtypeStruct((B, S, D), x.dtype),
        grid=(B, nq),
        in_specs=[
            pl.BlockSpec((1, TQ, D), lambda b, i: (b, i, 0)),
            pl.BlockSpec((1, TQ, D), lambda b, i: (b, i, 0)),
            pl.BlockSpec((1, D), lambda b, i: (0, 0)),
            pl.BlockSpec((1, D), lambda b, i: (0, 0)),
            pl.BlockSpec((D, 4 * D), lambda b, i: (0, 0)),
            pl.BlockSpec((1, 4 * D), lambda b, i: (0, 0)),
            pl.BlockSpec((4 * D, D), lambda b, i: (0, 0)),
            pl.BlockSpec((1, D), lambda b, i: (0, 0)),
        ],
        out_specs=pl.BlockSpec((1, TQ, D), lambda b, i: (b, i, 0)),
        compiler_params=pltpu.CompilerParams(
            dimension_semantics=("parallel", "parallel"),
            vmem_limit_bytes=_vmem_limit(est3)),
    )(x, attn, params["g2"], params["b2"], p["w1"], params["bf1"],
      p["w2"], params["bf2"])
    return out


# --------------------------------------------------------------------------- #
# Pure-JAX fp32 reference + synthetic params
# --------------------------------------------------------------------------- #
def ref_decoder_block(x, p, num_heads):
    def ln(h, g, b):
        mu = h.mean(-1, keepdims=True)
        var = ((h - mu) ** 2).mean(-1, keepdims=True)
        return (h - mu) / jnp.sqrt(var + EPS) * g + b

    B, S, D = x.shape
    dh = D // num_heads
    h = ln(x, p["g1"][0], p["b1"][0])
    q = h @ p["wq"] + p["bq"][0]
    k = h @ p["wk"] + p["bk"][0]
    v = h @ p["wv"] + p["bv"][0]
    q = q.reshape(B, S, num_heads, dh).transpose(0, 2, 1, 3)
    k = k.reshape(B, S, num_heads, dh).transpose(0, 2, 1, 3)
    v = v.reshape(B, S, num_heads, dh).transpose(0, 2, 1, 3)
    scores = jnp.einsum("bhqd,bhkd->bhqk", q, k) / jnp.sqrt(jnp.float32(dh))
    mask = jnp.tril(jnp.ones((S, S), dtype=bool))
    scores = jnp.where(mask, scores, -1e30)
    p_attn = jax.nn.softmax(scores, axis=-1)
    attn = jnp.einsum("bhqk,bhkd->bhqd", p_attn, v).transpose(0, 2, 1, 3).reshape(B, S, D)
    attn = attn @ p["wo"] + p["bo"][0]
    x = x + attn
    h2 = ln(x, p["g2"][0], p["b2"][0])
    f = jnp.maximum(h2 @ p["w1"] + p["bf1"][0], 0.0) @ p["w2"] + p["bf2"][0]
    return x + f


def make_params(key, D, use_bias=True):
    """Deterministic synthetic params. Biases/gains kept 2D (1, n) for VMEM layout."""
    ks = jax.random.split(key, 8)
    s = 0.02
    params = {
        "g1": jnp.ones((1, D), jnp.float32),
        "b1": jnp.zeros((1, D), jnp.float32),
        "g2": jnp.ones((1, D), jnp.float32),
        "b2": jnp.zeros((1, D), jnp.float32),
        "wq": s * jax.random.normal(ks[0], (D, D), jnp.float32),
        "wk": s * jax.random.normal(ks[1], (D, D), jnp.float32),
        "wv": s * jax.random.normal(ks[2], (D, D), jnp.float32),
        "wo": s * jax.random.normal(ks[3], (D, D), jnp.float32),
        "w1": s * jax.random.normal(ks[4], (D, 4 * D), jnp.float32),
        "w2": s * jax.random.normal(ks[5], (4 * D, D), jnp.float32),
    }
    bias_scale = s if use_bias else 0.0
    params["bq"] = bias_scale * jax.random.normal(ks[6], (1, D), jnp.float32)
    params["bk"] = bias_scale * jax.random.normal(ks[7], (1, D), jnp.float32)
    params["bv"] = jnp.zeros((1, D), jnp.float32) + (0.01 if use_bias else 0.0)
    params["bo"] = jnp.zeros((1, D), jnp.float32)
    params["bf1"] = jnp.zeros((1, 4 * D), jnp.float32) + (0.01 if use_bias else 0.0)
    params["bf2"] = jnp.zeros((1, D), jnp.float32)
    return params


if __name__ == "__main__":
    # Spec shapes: batch=2, sequence_len=8, num_hiddens=32, num_head=4.
    B, S, D, H = 2, 8, 32, 4
    key = jax.random.PRNGKey(0)
    kx, kp = jax.random.split(key)
    x = jax.random.normal(kx, (B, S, D), jnp.float32)
    params = make_params(kp, D, use_bias=True)

    # Default fast path: bf16 matmuls, fp32 accumulation / LN / softmax stats.
    out = jax.block_until_ready(decoder_block(x, params, num_heads=H))
    ref = ref_decoder_block(x, params, num_heads=H)
    assert out.shape == x.shape and out.dtype == x.dtype
    assert jnp.allclose(out, ref, rtol=3e-2, atol=3e-2), \
        f"bf16 path max abs err {jnp.max(jnp.abs(out - ref))}"

    # fp32 path (Precision.HIGHEST) at a shape exercising the triangular grid,
    # the unmasked interior path and multiple KV blocks.
    B2, S2, D2, H2 = 2, 16, 128, 4
    kx2, kp2 = jax.random.split(jax.random.PRNGKey(1))
    x2 = jax.random.normal(kx2, (B2, S2, D2), jnp.float32)
    params2 = make_params(kp2, D2, use_bias=True)
    out2 = jax.block_until_ready(
        decoder_block(x2, params2, num_heads=H2, block_q=8,
                      compute_dtype=jnp.float32))
    ref2 = ref_decoder_block(x2, params2, num_heads=H2)
    assert jnp.allclose(out2, ref2, rtol=1e-3, atol=1e-3), \
        f"fp32 path max abs err {jnp.max(jnp.abs(out2 - ref2))}"

    print("KERNEL_OK")
</pallas_src>

<mosaic_0001>
module attributes {stable_mosaic.version = 11 : i64} {
  func.func @qkv_proj_kernel(%arg0: i32, %arg1: i32, %arg2: memref<1x8x32xf32, #tpu.memory_space<vmem>>, %arg3: memref<1x32xf32, #tpu.memory_space<vmem>>, %arg4: memref<1x32xf32, #tpu.memory_space<vmem>>, %arg5: memref<32x96xbf16, #tpu.memory_space<vmem>>, %arg6: memref<1x96xf32, #tpu.memory_space<vmem>>, %arg7: memref<1x3x8x32xbf16, #tpu.memory_space<vmem>>) attributes {dimension_semantics = [#tpu.dimension_semantics<parallel>, #tpu.dimension_semantics<parallel>], iteration_bounds = array<i64: 2, 1>, scalar_prefetch = 0 : i64, scratch_operands = 0 : i64, tpu.core_type = #tpu.core_type<tc>, window_params = [{transform_indices = @transform_0, window_bounds = array<i64: 1, 8, 32>}, {pipeline_mode = #tpu.pipeline_mode<synchronous>, transform_indices = @transform_1, window_bounds = array<i64: 1, 32>}, {pipeline_mode = #tpu.pipeline_mode<synchronous>, transform_indices = @transform_2, window_bounds = array<i64: 1, 32>}, {pipeline_mode = #tpu.pipeline_mode<synchronous>, transform_indices = @transform_3, window_bounds = array<i64: 32, 96>}, {pipeline_mode = #tpu.pipeline_mode<synchronous>, transform_indices = @transform_4, window_bounds = array<i64: 1, 96>}, {transform_indices = @transform_5, window_bounds = array<i64: 1, 3, 8, 32>}]} {
    %c0 = arith.constant 0 : index
    %c0_0 = arith.constant 0 : index
    %c0_1 = arith.constant 0 : index
    %0 = vector.load %arg2[%c0, %c0_0, %c0_1] : memref<1x8x32xf32, #tpu.memory_space<vmem>>, vector<1x8x32xf32>
    %1 = vector.shape_cast %0 : vector<1x8x32xf32> to vector<8x32xf32>
    %c0_2 = arith.constant 0 : index
    %c0_3 = arith.constant 0 : index
    %2 = vector.load %arg3[%c0_2, %c0_3] : memref<1x32xf32, #tpu.memory_space<vmem>>, vector<1x32xf32>
    %c0_4 = arith.constant 0 : index
    %c0_5 = arith.constant 0 : index
    %3 = vector.load %arg4[%c0_4, %c0_5] : memref<1x32xf32, #tpu.memory_space<vmem>>, vector<1x32xf32>
    %cst = arith.constant dense<0.000000e+00> : vector<8xf32>
    %4 = vector.multi_reduction <add>, %1, %cst [1] : vector<8x32xf32> to vector<8xf32>
    %5 = vector.shape_cast %4 : vector<8xf32> to vector<8x1xf32>
    %cst_6 = arith.constant 3.200000e+01 : f32
    %6 = vector.broadcast %cst_6 : f32 to vector<8x1xf32>
    %7 = arith.divf %5, %6 : vector<8x1xf32>
    %8 = vector.broadcast %7 : vector<8x1xf32> to vector<8x32xf32>
    %9 = arith.subf %1, %8 : vector<8x32xf32>
    %10 = arith.mulf %9, %9 : vector<8x32xf32>
    %cst_7 = arith.constant dense<0.000000e+00> : vector<8xf32>
    %11 = vector.multi_reduction <add>, %10, %cst_7 [1] : vector<8x32xf32> to vector<8xf32>
    %12 = vector.shape_cast %11 : vector<8xf32> to vector<8x1xf32>
    %cst_8 = arith.constant 3.200000e+01 : f32
    %13 = vector.broadcast %cst_8 : f32 to vector<8x1xf32>
    %14 = arith.divf %12, %13 : vector<8x1xf32>
    %15 = vector.broadcast %7 : vector<8x1xf32> to vector<8x32xf32>
    %16 = arith.subf %1, %15 : vector<8x32xf32>
    %cst_9 = arith.constant 9.99999974E-6 : f32
    %17 = vector.broadcast %cst_9 : f32 to vector<8x1xf32>
    %18 = arith.addf %14, %17 : vector<8x1xf32>
    %19 = math.rsqrt %18 : vector<8x1xf32>
    %20 = vector.broadcast %19 : vector<8x1xf32> to vector<8x32xf32>
    %21 = arith.mulf %16, %20 : vector<8x32xf32>
    %22 = vector.broadcast %2 : vector<1x32xf32> to vector<8x32xf32>
    %23 = arith.mulf %21, %22 : vector<8x32xf32>
    %24 = vector.broadcast %3 : vector<1x32xf32> to vector<8x32xf32>
    %25 = arith.addf %23, %24 : vector<8x32xf32>
    %26 = arith.truncf %25 : vector<8x32xf32> to vector<8x32xbf16>
    %c0_10 = arith.constant 0 : index
    %c0_11 = arith.constant 0 : index
    %27 = vector.load %arg5[%c0_10, %c0_11] : memref<32x96xbf16, #tpu.memory_space<vmem>>, vector<32x96xbf16>
    %cst_12 = arith.constant dense<0.000000e+00> : vector<8x96xf32>
    %28 = tpu.matmul %26, %27, %cst_12 {dimension_numbers = #tpu.dot_dimension_numbers<[1], [0], [0], [1], [0, 0, 1, 1], [], []>} : vector<8x32xbf16>, vector<32x96xbf16>, vector<8x96xf32> -> vector<8x96xf32>
    %c0_13 = arith.constant 0 : index
    %c0_14 = arith.constant 0 : index
    %29 = vector.load %arg6[%c0_13, %c0_14] : memref<1x96xf32, #tpu.memory_space<vmem>>, vector<1x96xf32>
    %30 = vector.broadcast %29 : vector<1x96xf32> to vector<8x96xf32>
    %31 = arith.addf %28, %30 : vector<8x96xf32>
    %32 = vector.extract_strided_slice %31 {offsets = [0, 0], sizes = [8, 32], strides = [1, 1]} : vector<8x96xf32> to vector<8x32xf32>
    %cst_15 = arith.constant 0.353553385 : f32
    %33 = vector.broadcast %cst_15 : f32 to vector<8x32xf32>
    %34 = arith.mulf %32, %33 : vector<8x32xf32>
    %35 = arith.truncf %34 : vector<8x32xf32> to vector<8x32xbf16>
    %c0_16 = arith.constant 0 : index
    %c0_17 = arith.constant 0 : index
    %c0_18 = arith.constant 0 : index
    %c0_19 = arith.constant 0 : index
    %36 = vector.load %arg7[%c0_16, %c0_17, %c0_18, %c0_19] : memref<1x3x8x32xbf16, #tpu.memory_space<vmem>>, vector<1x1x8x32xbf16>
    %37 = vector.shape_cast %36 : vector<1x1x8x32xbf16> to vector<8x32xbf16>
    %38 = vector.shape_cast %35 : vector<8x32xbf16> to vector<1x1x8x32xbf16>
    tpu.vector_store %arg7[%c0_16, %c0_17, %c0_18, %c0_19], %38 {strides = array<i32>} : memref<1x3x8x32xbf16, #tpu.memory_space<vmem>>, vector<1x1x8x32xbf16>,
    %39 = vector.extract_strided_slice %31 {offsets = [0, 32], sizes = [8, 32], strides = [1, 1]} : vector<8x96xf32> to vector<8x32xf32>
    %40 = arith.truncf %39 : vector<8x32xf32> to vector<8x32xbf16>
    %c0_20 = arith.constant 0 : index
    %c1 = arith.constant 1 : index
    %c0_21 = arith.constant 0 : index
    %c0_22 = arith.constant 0 : index
    %41 = vector.load %arg7[%c0_20, %c1, %c0_21, %c0_22] : memref<1x3x8x32xbf16, #tpu.memory_space<vmem>>, vector<1x1x8x32xbf16>
    %42 = vector.shape_cast %41 : vector<1x1x8x32xbf16> to vector<8x32xbf16>
    %43 = vector.shape_cast %40 : vector<8x32xbf16> to vector<1x1x8x32xbf16>
    tpu.vector_store %arg7[%c0_20, %c1, %c0_21, %c0_22], %43 {strides = array<i32>} : memref<1x3x8x32xbf16, #tpu.memory_space<vmem>>, vector<1x1x8x32xbf16>,
    %44 = vector.extract_strided_slice %31 {offsets = [0, 64], sizes = [8, 32], strides = [1, 1]} : vector<8x96xf32> to vector<8x32xf32>
    %45 = arith.truncf %44 : vector<8x32xf32> to vector<8x32xbf16>
    %c0_23 = arith.constant 0 : index
    %c2 = arith.constant 2 : index
    %c0_24 = arith.constant 0 : index
    %c0_25 = arith.constant 0 : index
    %46 = vector.load %arg7[%c0_23, %c2, %c0_24, %c0_25] : memref<1x3x8x32xbf16, #tpu.memory_space<vmem>>, vector<1x1x8x32xbf16>
    %47 = vector.shape_cast %46 : vector<1x1x8x32xbf16> to vector<8x32xbf16>
    %48 = vector.shape_cast %45 : vector<8x32xbf16> to vector<1x1x8x32xbf16>
    tpu.vector_store %arg7[%c0_23, %c2, %c0_24, %c0_25], %48 {strides = array<i32>} : memref<1x3x8x32xbf16, #tpu.memory_space<vmem>>, vector<1x1x8x32xbf16>,
    return
  }
  func.func @transform_0(%arg0: i32, %arg1: i32) -> (i32, i32, i32) {
    %c0_i32 = arith.constant 0 : i32
    %c0_i32_0 = arith.constant 0 : i32
    return %arg0, %arg1, %c0_i32 : i32, i32, i32
  }
  func.func @transform_1(%arg0: i32, %arg1: i32) -> (i32, i32) {
    %c0_i32 = arith.constant 0 : i32
    %c0_i32_0 = arith.constant 0 : i32
    %c0_i32_1 = arith.constant 0 : i32
    return %c0_i32, %c0_i32_0 : i32, i32
  }
  func.func @transform_2(%arg0: i32, %arg1: i32) -> (i32, i32) {
    %c0_i32 = arith.constant 0 : i32
    %c0_i32_0 = arith.constant 0 : i32
    %c0_i32_1 = arith.constant 0 : i32
    return %c0_i32, %c0_i32_0 : i32, i32
  }
  func.func @transform_3(%arg0: i32, %arg1: i32) -> (i32, i32) {
    %c0_i32 = arith.constant 0 : i32
    %c0_i32_0 = arith.constant 0 : i32
    %c0_i32_1 = arith.constant 0 : i32
    return %c0_i32, %c0_i32_0 : i32, i32
  }
  func.func @transform_4(%arg0: i32, %arg1: i32) -> (i32, i32) {
    %c0_i32 = arith.constant 0 : i32
    %c0_i32_0 = arith.constant 0 : i32
    %c0_i32_1 = arith.constant 0 : i32
    return %c0_i32, %c0_i32_0 : i32, i32
  }
  func.func @transform_5(%arg0: i32, %arg1: i32) -> (i32, i32, i32, i32) {
    %c0_i32 = arith.constant 0 : i32
    %c0_i32_0 = arith.constant 0 : i32
    %c0_i32_1 = arith.constant 0 : i32
    return %arg0, %c0_i32, %arg1, %c0_i32_0 : i32, i32, i32, i32
  }
}

</mosaic_0001>

<bundles_post_ra>
// kernel: tpu_custom_call.1
= control target key start
LH: loop header
LB: loop body
LE: loop exit
PB: predicated region body
PF: predicated region fallthrough
CT: control target
= control target key end

     0   :  { %10 = vsyncpa [#allocation3], 0  ;;  %s1037_s0 = inlined_call_operand.hbm [shape: f32[2,8,32], index: 0, kind: input, shape index: {}]   ;;  %s1038_s1 = inlined_call_operand.vmem [shape: f32[1,32], index: 1, kind: input, shape index: {}]   ;;  %s1039_s2 = inlined_call_operand.vmem [shape: f32[1,32], index: 2, kind: input, shape index: {}]   ;;  %s1040_s3 = inlined_call_operand.hbm [shape: bf16[32,96], index: 3, kind: input, shape index: {}]   ;;  %s1041_s4 = inlined_call_operand.vmem [shape: f32[1,96], index: 4, kind: input, shape index: {}]   ;;  %s1042_s5 = inlined_call_operand.hbm [shape: bf16[2,3,8,32], index: 5, kind: output, shape index: {}]  }
   0x1   :  { %12 = vsyncpa [#allocation3 + $0x1], 0 }
   0x2   :  { %13 = vsyncpa [#allocation6], 0 }
   0x3   :  { %14 = vsyncpa [#allocation4], 0 }
   0x4   :  { %16 = vsyncpa [#allocation4 + $0x1], 0  ;;  %s805_s18 = smov 0   ;;  %s807_s19 = smov 0  }
   0x5   :  { %s809_s20 = smov 0   ;;  %s811_s21 = smov 0  }
   0x6   :  { %s813_s22 = smov 0   ;;  %s815_s23 = smov 0  }
   0x7 LB: > { %s499_s24 = sadd.s32 4294967295, %s763_s23   ;;  %s500_s25 = sadd.s32 4294967294, %s763_s23   ;;  %s763_s23 = sphi %s815_s23, %s22_s23   ;;  %s759_s22 = sphi %s813_s22, %s1066_s22   ;;  %s755_s21 = sphi %s811_s21, %s1065_s21   ;;  %s751_s20 = sphi %s809_s20, %s1064_s20   ;;  %s747_s19 = sphi %s807_s19, %s1063_s19   ;;  %s743_s18 = sphi %s805_s18, %s1062_s18  }
   0x8   : > { %p56_p0 = scmp.ne.s32.totalorder %s747_s19, %s743_s18  ;;  %p839_p1 = scmp.eq.s32.totalorder %s499_s24, 0 }
   0x9   : > { %p843_p2 = scmp.eq.s32.totalorder %s499_s24, 1  ;;  %p172_p3 = scmp.eq.s32.totalorder %s500_s25, 1 }
   0xa   : > { %s1047_s26 = scalar_select %p839_p1, 1, 0 }
   0xb   : > { %s1048_s27 = scalar_select %p843_p2, 1, 0 }
   0xc   : > { %p849_p4 = por %p839_p1, %p56_p0  ;;  %p501_p5 = scmp.ge.s32.totalorder %s763_s23, 1 }
   0xd   : > { %p854_p6 = por %p172_p3, %p56_p0  ;;  %p179_p7 = scmp.lt.s32.totalorder %s763_s23, 3 }
   0xe   : > { %s1049_s28 = scalar_select %p849_p4, 1, 0 }
   0xf   : > { %s1050_s29 = scalar_select %p854_p6, 1, 0 }
  0x10   : > { %p859_p8 = pnand %p501_p5, %p179_p7  ;;  %s765_s6 = smov [#allocation5]  }
  0x11   : > { %s197_s7 = sshll.u32 %s765_s6, 4  ;;  %s34_s9 = sadd.s32 1, %s759_s22  ;;  %s198_s7 = int_to_ptr.vmem [resolvable:$true] %s197_s7 }
  0x12   : > { %s1051_s30 = scalar_select %p859_p8, 1, 0 }
  0x13   : > { %p543_p9 = pneg %p859_p8  ;;  %s619_s12 = scalar_lea.hbm %s1040_s3, 256 }
  0x14   : > { %p620_p12 = scmp.ne.s32.totalorder %s1040_s3, %s619_s12  ;;  %p626_p5 = scmp.lt.u32.totalorder %s619_s12, %s1040_s3 }
  0x15   : > { %p868_p11 = pnand %p543_p9, %p839_p1 }
  0x17   : > { %p621_p13 = pneg %p868_p11 }
  0x19   : > { %p622_p0 = pnand %p621_p13, %p620_p12 }
  0x1b   : > { %p623_p3 = pneg %p622_p0 }
  0x1d   : > { %p628_p7 = pnand %p626_p5, %p623_p3 }
  0x1f   : > { %631 = shalt.err (!%p628_p7)
}
  0x20   : > { %s632_s17 = scalar_lea.vmem %s198_s7, 256  ;;  %p640_p1 = scmp.lt.s32.totalorder %s198_s7, %s198_s7 }
  0x21   : > { %p633_p9 = scmp.ne.s32.totalorder %s198_s7, %s632_s17  ;;  %p641_p4 = scmp.lt.s32.totalorder %s632_s17, %s632_s17 }
  0x23   : > { %p635_p10 = pnand %p633_p9, %p621_p13  ;;  %p642_p8 = por %p641_p4, %p640_p1 }
  0x25   : > { %p636_p6 = pneg %p635_p10 }
  0x27   : > { %p643_p2 = pnand %p642_p8, %p636_p6 }
  0x29   : > { %646 = shalt.err (!%p643_p2)
}
  0x2a   : > { %s766_s24 = smov 64   ;;  %s767_s25 = smov 4  }
  0x2b   : > { %546 = dma.hbm_to_vmem [thread:$0]  (!%p868_p11), %s1040_s3, 256, %s198_s7, [#allocation6], %s766_s24, %s766_s24, %s767_s25  }
  0x2c   : > { %p36_p1 = scmp.ge.s32.totalorder %s34_s9, 2  ;;  %s43_s11 = sadd.s32 1, %s751_s20 }
  0x2d   : > { %p50_p2 = scmp.ne.s32.totalorder %s751_s20, %s747_s19  ;;  %p51_p4 = scmp.eq.s32.totalorder %s763_s23, 0 }
  0x2e   : > { %s1068_s9 = smov (%p36_p1, %s34_s9), 0  ;;  %p1054_p8 = scmp.ne.s32.totalorder %s1048_s27, 0 }
  0x2f   : > { %p895_p6 = por %p51_p4, %p50_p2  ;;  %s38_s8 = ssub.s32 %s759_s22, %s1068_s9 }
  0x30   : > { %p901_p10 = por %p1054_p8, %p50_p2  ;;  %p556_p12 = scmp.lt.s32.totalorder %s763_s23, 2 }
  0x31   : > { %p41_p11 = scmp.eq.s32.totalorder %s38_s8, 0  ;;  %s214_s7 = sand.u32 1, %s751_s20  }
  0x32   : > { %s504_s14 = sshll.u32 %s214_s7, 3  ;;  %s505_s16 = sshll.u32 %s759_s22, 7 }
  0x33   : > { %s910_s15 = scalar_select %p41_p11, %s751_s20, %s43_s11  }
  0x34   : > { %s916_s25 = scalar_lea.hbm %s1037_s0, %s505_s16  ;;  %s218_s27 = scalar_lea.vmem [#allocation2], %s504_s14 }
  0x35   : > { %s226_s6 = sshll.u32 %s218_s27, 4  ;;  %p922_p13 = pnand %p556_p12, %p895_p6  ;;  %s918_s6 = int_to_ptr.vmem [resolvable:$true] %s226_s6 }
  0x36   : > { %s215_s11 = scalar_lea.sflag [#allocation3], %s214_s7  ;;  %s647_s8 = scalar_lea.hbm %s916_s25, 128 }
  0x37   : > { %p648_p0 = scmp.ne.s32.totalorder %s916_s25, %s647_s8  ;;  %p649_p3 = pneg %p922_p13 }
  0x38   : > { %s652_s17 = scalar_lea.hbm %s1037_s0, 256  ;;  %p653_p9 = scmp.lt.u32.totalorder %s916_s25, %s1037_s0 }
  0x39   : > { %p650_p5 = pnand %p649_p3, %p648_p0  ;;  %p654_p1 = scmp.lt.u32.totalorder %s652_s17, %s647_s8 }
  0x3a   : > { %p656_p4 = scmp.lt.u32.totalorder %s647_s8, %s916_s25 }
  0x3b   : > { %p651_p7 = pneg %p650_p5  ;;  %p655_p2 = por %p654_p1, %p653_p9 }
  0x3d   : > { %p657_p6 = por %p656_p4, %p655_p2 }
  0x3f   : > { %p658_p8 = pnand %p657_p6, %p651_p7 }
  0x41   : > { %661 = shalt.err (!%p658_p8)
}
  0x42   : > { %s662_s7 = scalar_lea.vmem %s918_s6, 128  ;;  %s768_s27 = smov [#allocation2]  }
  0x43   : > { %p663_p12 = scmp.ne.s32.totalorder %s918_s6, %s662_s7  ;;  %s667_s14 = sshll.u32 %s768_s27, 4  ;;  %s668_s14 = int_to_ptr.vmem [resolvable:$false] %s667_s14 }
  0x44   : > { %s669_s16 = scalar_lea.vmem %s668_s14, 256  ;;  %p670_p5 = scmp.lt.s32.totalorder %s918_s6, %s668_s14 }
  0x45   : > { %p665_p11 = pnand %p663_p12, %p649_p3  ;;  %p671_p9 = scmp.lt.s32.totalorder %s669_s16, %s662_s7 }
  0x47   : > { %p666_p0 = pneg %p665_p11  ;;  %p672_p1 = por %p671_p9, %p670_p5 }
  0x49   : > { %p673_p2 = pnand %p672_p1, %p666_p0 }
  0x4b   : > { %676 = shalt.err (!%p673_p2)
}
  0x4c   : > { %550 = dma.hbm_to_vmem [thread:$0]  (!%p922_p13), %s916_s25, 128, %s918_s6, %s215_s11  }
  0x4d   : > { %p1057_p7 = scmp.ne.s32.totalorder %s1051_s30, 0 }
  0x4e   : > { %s954_s8 = sand.u32 (!%p1057_p7), 1, %s747_s19   ;;  %p1058_p3 = scmp.ne.s32.totalorder (!%p1057_p7), %s1049_s28, 0 }
  0x4f   : > { %235 = sbr.rel (%p1057_p7) target bundleno = 756 (0x2f4), region = 40  ;;  %s507_s17 = sshll.u32 (!%p1057_p7), %s954_s8, 3 }
  0x50   : > { %s238_s12 = scalar_lea.sflag (!%p1057_p7), [#allocation3], %s954_s8  ;;  %s241_s24 = scalar_lea.vmem (!%p1057_p7), [#allocation2], %s507_s17 }
  0x56   : > { %730 = dma.done.wait (%p1058_p3), %s238_s12, 128  }
  0x57   : > { %732 = vsyncadd (%p1058_p3), %s238_s12, 4294967168  ;;  %p1059_p4 = scmp.ne.s32.totalorder %s1047_s26, 0 }
  0x59   : > { %734 = dma.done.wait (%p1059_p4), [#allocation6], 256  }
  0x5a   : > { %736 = vsyncadd (%p1059_p4), [#allocation6], 4294967040  ;;  %vm276_vm0 = vcmask 261120   ;;  %v273_v0 = vld [vmem:[%s241_s24] sm:$0xff]  ;;  %v615_v7 = vld [vmem:[#allocation5] sm:$0xff]   ;;  %v769_v8 = vmov 0.0  }
  0x5b   : > { %v277_v1 = vsel %vm276_vm0, %v273_v0, 0.0  ;;  %525 = vmatprep.subr.bf16.mxu0 %v769_v8  ;;  %v616_v9 = vld [vmem:[#allocation5 + $0x8] sm:$0xff]   ;;  %vm770_vm1 = vmmov 0   ;;  %v509_v14 = vld [vmem:[%s1038_s1] ss:$0 sm:$0xff]  ;;  %s533_s11 = smul.u32 12, %s954_s8 }
  0x5c   : > { %278 = vadd.xlane.f32.xlu0 %v277_v1  ;;  %526 = vmatpush3.bf16.msra.mxu0 %v615_v7  ;;  %v510_v16 = vld [vmem:[%s1039_s2] ss:$0 sm:$0xff]  ;;  %vm374_vm2 = vcmask 257024   ;;  %s771_s7 = smov 96   ;;  %s772_s14 = smov 64  }
  0x5d   : > { %529 = vmatprep.mubr.msk.bf16.mxu0 %vm770_vm1, %v769_v8  ;;  %527 = vmatprep.subr.bf16.mxu0 %v769_v8  ;;  %v511_v20 = vld [vmem:[%s1041_s4] ss:$0 sm:$0xff]  ;;  %s271_s27 = scalar_lea.vmem [#allocation7], %s533_s11  ;;  %s534_s17 = smul.u32 192, %s755_s21 }
  0x5e   : > { %s405_s16 = sshll.u32 %s271_s27, 4  ;;  %s391_s28 = scalar_lea.sflag [#allocation4], %s954_s8  ;;  %s981_s16 = int_to_ptr.vmem [resolvable:$true] %s405_s16 }
  0x5f   : > { %s986_s26 = scalar_lea.hbm %s1042_s5, %s534_s17  ;;  %s677_s30 = scalar_lea.vmem %s981_s16, 192 }
  0x60   : > { %528 = vmatpush3.bf16.msra.mxu0 %v616_v9  ;;  %p678_p13 = scmp.ne.s32.totalorder %s981_s16, %s677_s30  ;;  %s773_s21 = smov [#allocation7]  }
  0x61   : > { %s681_s25 = sshll.u32 %s773_s21, 4  ;;  %s682_s25 = int_to_ptr.vmem [resolvable:$false] %s681_s25 }
  0x62   : > { %p679_p6 = pnand %p678_p13, %p901_p10  ;;  %s683_s6 = scalar_lea.vmem %s682_s25, 384 }
  0x63   : > { %p684_p12 = scmp.lt.s32.totalorder %s981_s16, %s682_s25  ;;  %p685_p11 = scmp.lt.s32.totalorder %s683_s6, %s677_s30 }
  0x64   : > { %p680_p8 = pneg %p679_p6 }
  0x65   : > { %p686_p0 = por %p685_p11, %p684_p12 }
  0x67   : > { %p687_p5 = pnand %p686_p0, %p680_p8 }
  0xe9   : > { %v279_v2 = vpop.xlane.xlu0 %278 }
  0xea   : > { %v281_v3 = vmul.f32 0.03125, %v279_v2 }
  0xec   : > { %v282_v4 = vsub.f32 %v273_v0, %v281_v3 }
  0xee   : > { %v283_v5 = vmul.f32 %v282_v4, %v282_v4 }
  0xf0   : > { %v284_v6 = vsel %vm276_vm0, %v283_v5, 0.0 }
  0xf1   : > { %285 = vadd.xlane.f32.xlu0 %v284_v6 }
 0x17e   : > { %v286_v10 = vpop.xlane.xlu0 %285 }
 0x17f   : > { %v287_v11 = vmul.f32 0.03125, %v286_v10 }
 0x181   : > { %v288_v12 = vadd.f32 1e-05, %v287_v11 }
 0x183   : > { %617 = vrsqrt.f32 %v288_v12 }
 0x18d   : > { %v618_v13 = vpop.eup %617 }
 0x18e   : > { %v290_v15 = vmul.f32 %v618_v13, %v282_v4 }
 0x190   : > { %v297_v17 = vmul.f32 %v509_v14, %v290_v15 }
 0x192   : > { %v304_v18 = vadd.f32 %v510_v16, %v297_v17 }
 0x194   : > { %v305_v19 = vpack.c.bf16 %v304_v18, %v304_v18 }
 0x196   : > { %530 = vmatmul.mubr.msk.bf16.vlgmr.msra.gmra.mrb[0].mxu0 %vm276_vm0, %v305_v19 }
 0x269   : > { %v366_v21 = vpop.f32.mrb[0].mxu0 }
 0x26a   : > { %v367_v22 = vadd.f32 %v511_v20, %v366_v21  ;;  %v531_v23 = vpop.f32.mrb[1].mxu0 }
 0x26b   : > { %v369_v24 = vpop.f32.mrb[2].mxu0 }
 0x26c   : > { %v372_v25 = vmul.f32 0.35355338, %v367_v22  ;;  %v532_v26 = vpop.f32.mrb[3].mxu0  ;;  %v521_v27 = vpack.c.bf16 %v367_v22, %v367_v22 }
 0x26e   : > { %v373_v28 = vpack.c.bf16 %v372_v25, %v372_v25  ;;  %380 = vrot.lane.b32.xlu1 %v521_v27, %s771_s7 }
 0x270   : > { %375 = vst.msk [vmem:[%s271_s27] sm:$0xf] %vm374_vm2, %v373_v28 }
 0x272   : > { %385 = vrot.lane.b32.xlu1 %v521_v27, %s772_s14 }
 0x2e0   : > { %v381_v29 = vpop.permute.xlu1 %380 }
 0x2e1   : > { %516 = vst.msk [vmem:[%s271_s27 + $0x4] sm:$0xf] %vm374_vm2, %v381_v29 }
 0x2e4   : > { %v386_v30 = vpop.permute.xlu1 %385 }
 0x2e5   : > { %517 = vst.msk [vmem:[%s271_s27 + $0x8] sm:$0xf] %vm374_vm2, %v386_v30 }
 0x2e6   : > { %690 = shalt.err (!%p687_p5)
}
 0x2e7   : > { %s691_s10 = scalar_lea.hbm %s986_s26, 192  ;;  %s695_s27 = scalar_lea.hbm %s1042_s5, 384 }
 0x2e8   : > { %p692_p9 = scmp.ne.s32.totalorder %s986_s26, %s691_s10  ;;  %p696_p7 = scmp.lt.u32.totalorder %s986_s26, %s1042_s5 }
 0x2e9   : > { %p697_p3 = scmp.lt.u32.totalorder %s695_s27, %s691_s10  ;;  %p699_p13 = scmp.lt.u32.totalorder %s691_s10, %s986_s26 }
 0x2ea   : > { %p693_p1 = pnand %p692_p9, %p901_p10 }
 0x2eb   : > { %p698_p4 = por %p697_p3, %p696_p7 }
 0x2ec   : > { %p694_p2 = pneg %p693_p1 }
 0x2ed   : > { %p700_p6 = por %p699_p13, %p698_p4 }
 0x2ef   : > { %p701_p8 = pnand %p700_p6, %p694_p2 }
 0x2f1   : > { %704 = shalt.err (!%p701_p8)
}
 0x2f2   : > { %s774_s24 = smov 4  }
 0x2f3   : > { %541 = dma.vmem_to_hbm [thread:$0]  (%p901_p10), %s981_s16, 192, %s986_s26, %s391_s28, %s772_s14, %s772_s14, %s774_s24  }
 0x2f4 PF: > { %s420_s30 = sand.u32 1, %s743_s18   ;;  %p1060_p12 = scmp.ne.s32.totalorder %s1050_s29, 0 }
 0x2f5   : > { %p1061_p11 = scmp.ge.s32.totalorder %s763_s23, 2  ;;  %s421_s21 = scalar_lea.sflag [#allocation4], %s420_s30 }
 0x2f7   : > { %p552_p0 = pnand %p1061_p11, %p1060_p12 }
 0x2f9   : > { %738 = dma.done.wait (!%p552_p0), %s421_s21, 192  }
 0x2fa   : > { %740 = vsyncadd (!%p552_p0), %s421_s21, 4294967104  ;;  %s22_s23 = sadd.s32 1, %s763_s23   ;;  %s1062_s18 = smov %s747_s19 }
 0x2fb   : > { %p19_p5 = scmp.ge.s32.totalorder %s22_s23, 4   ;;  %s1063_s19 = smov %s751_s20 }
 0x2fc   : > { %s1064_s20 = smov %s910_s15  ;;  %s1065_s21 = smov %s759_s22 }
 0x2fd   : > { %s1066_s22 = smov %s1068_s9  ;;  %21 = sbr.rel (!%p19_p5) target bundleno = 7 (0x7), region = 91 }
 0x304   :  { %426 = vsyncpa [#allocation3], 1 }
 0x305   :  { %428 = vsyncpa [#allocation3 + $0x1], 1 }
 0x306   :  { %429 = vsyncpa [#allocation6], 1 }
 0x307   :  { %430 = vsyncpa [#allocation4], 1 }
 0x308   :  { %432 = vsyncpa [#allocation4 + $0x1], 1 }

</bundles_post_ra>
